<compile_context>
chip_gen: v5e
topology: v5e:2x2
jax: 0.10.0
libtpu: 0.0.40
codegen_flags: <defaults>
</compile_context>

<pallas_src>
import functools

import jax
import jax.numpy as jnp
from jax.experimental import pallas as pl
from jax.experimental.pallas import tpu as pltpu

EPS = 1e-5


# ----------------------------------------------------------------------------
# pltpu.roll sign-convention probe (one tiny kernel, cached)
# ----------------------------------------------------------------------------
@functools.lru_cache(maxsize=1)
def _roll_matches_jnp() -> bool:
    """True iff pltpu.roll(x, shift, axis)[i] == x[(i - shift) % n] (jnp.roll).

    The depthwise conv below relies on sublane rotations; probing the
    convention once on-device makes the tap shifts correct under either
    definition.
    """

    def kern(x_ref, o_ref):
        o_ref[...] = pltpu.roll(x_ref[...], shift=1, axis=0)

    x = jax.lax.broadcasted_iota(jnp.float32, (8, 128), 0)
    out = pl.pallas_call(
        kern, out_shape=jax.ShapeDtypeStruct((8, 128), jnp.float32))(x)
    v = float(out[0, 0])
    if v == 7.0:
        return True
    if v == 1.0:
        return False
    raise RuntimeError(f"unexpected pltpu.roll behaviour (probe value {v})")


# ----------------------------------------------------------------------------
# Stem: patchify conv (== matmul) + bias with fused LayerNorm epilogue
# ----------------------------------------------------------------------------
def _row_block(m, target=512):
    """Row tile for the stem matmul: one grid step for small M (avoids fixed
    per-step overhead on single-TC v5e/v6e); otherwise the largest tile
    <= target so the grid pipelines / feeds both v7x TensorCores."""
    if m <= target:
        return m
    for c in (512, 256, 128, 64, 32, 16, 8):
        if c <= target and m % c == 0:
            return c
    return m


def _stem_ln_kernel(x_ref, w_ref, b_ref, g_ref, beta_ref, o_ref):
    acc = jnp.dot(x_ref[...].astype(jnp.bfloat16), w_ref[...],
                  preferred_element_type=jnp.float32)
    acc = acc + b_ref[...]
    mu = jnp.mean(acc, axis=-1, keepdims=True)
    var = jnp.mean((acc - mu) ** 2, axis=-1, keepdims=True)
    xn = (acc - mu) * jax.lax.rsqrt(var + EPS)
    o_ref[...] = (xn * g_ref[...] + beta_ref[...]).astype(o_ref.dtype)


def stem_patchify_ln(patches, w_bf16, b, gamma, beta):
    M, K = patches.shape
    N = w_bf16.shape[1]
    rb = _row_block(M)
    return pl.pallas_call(
        _stem_ln_kernel,
        out_shape=jax.ShapeDtypeStruct((M, N), jnp.bfloat16),
        grid=(M // rb,),
        in_specs=[
            pl.BlockSpec((rb, K), lambda i: (i, 0)),
            pl.BlockSpec((K, N), lambda i: (0, 0)),   # weights stay resident
            pl.BlockSpec((1, N), lambda i: (0, 0)),
            pl.BlockSpec((1, N), lambda i: (0, 0)),
            pl.BlockSpec((1, N), lambda i: (0, 0)),
        ],
        out_specs=pl.BlockSpec((rb, N), lambda i: (i, 0)),
        compiler_params=pltpu.CompilerParams(dimension_semantics=("parallel",)),
    )(patches, w_bf16, b, gamma, beta)


# ----------------------------------------------------------------------------
# Fused ConvNextDownStage: depth x (dwconv + LN + MLP + residual) + downsample
# ----------------------------------------------------------------------------
def _stage_kernel(x_ref, cw_ref, cb_ref, g_ref, bn_ref, w1_ref, b1_ref,
                  w2_ref, b2_ref, dsw_ref, dsb_ref, o_ref, y_scr,
                  *, H, W, K, depth, roll_like_jnp):
    bb = x_ref.shape[0]
    C = x_ref.shape[3]
    p = K // 2
    M = bb * H * W

    # Resident activation: channels on lanes, flattened (b, h, w) on sublanes.
    x = x_ref[...].astype(jnp.float32).reshape(M, C)

    # Spatial indices for conv edge masks (shared by all taps / all blocks).
    row = jax.lax.broadcasted_iota(jnp.int32, (bb, H, W, C), 1).reshape(M, C)
    col = jax.lax.broadcasted_iota(jnp.int32, (bb, H, W, C), 2).reshape(M, C)

    for d in range(depth):              # depth is small & static -> unrolled
        # ---- depthwise KxK conv: XLU rolls + VPU fma, no unaligned slices ---
        acc = jnp.zeros((M, C), jnp.float32)
        for dh in range(K):
            for dw in range(K):
                lo_r, hi_r = p - dh, H + p - dh     # valid output rows
                lo_c, hi_c = p - dw, W + p - dw     # valid output cols
                if lo_r >= H or hi_r <= 0 or lo_c >= W or hi_c <= 0:
                    continue                        # tap never valid
                s = (dh - p) * W + (dw - p)         # flat source offset
                shift = ((-s) if roll_like_jnp else s) % M
                tap = x if shift == 0 else pltpu.roll(x, shift=shift, axis=0)
                contrib = tap * cw_ref[d, dh * K + dw, :]
                mask = None
                if lo_r > 0:
                    mask = row >= lo_r
                if hi_r < H:
                    m = row < hi_r
                    mask = m if mask is None else mask & m
                if lo_c > 0:
                    m = col >= lo_c
                    mask = m if mask is None else mask & m
                if hi_c < W:
                    m = col < hi_c
                    mask = m if mask is None else mask & m
                if mask is not None:
                    contrib = jnp.where(mask, contrib, 0.0)
                acc = acc + contrib
        y = acc + cb_ref[d]

        # ---- LayerNorm over channels -----------------------------------
        mu = jnp.mean(y, axis=-1, keepdims=True)
        var = jnp.mean((y - mu) ** 2, axis=-1, keepdims=True)
        yn = (y - mu) * jax.lax.rsqrt(var + EPS)
        yn = yn * g_ref[d] + bn_ref[d]

        # ---- MLP: Linear(C->F) -> relu^2 -> Linear(F->C); bf16 MXU ------
        h1 = jnp.dot(yn.astype(jnp.bfloat16), w1_ref[d],
                     preferred_element_type=jnp.float32) + b1_ref[d]
        h1 = jnp.maximum(h1, 0.0)
        h1 = h1 * h1                                 # relu^2
        mlp = jnp.dot(h1.astype(jnp.bfloat16), w2_ref[d],
                      preferred_element_type=jnp.float32) + b2_ref[d]

        # ---- residual ----------------------------------------------------
        x = x + mlp

    # ---- fused 2x2 stride-2 downsample (space-to-depth + matmul) ----------
    Ho, Wo = H // 2, W // 2
    Cout = dsw_ref.shape[-1]
    y_scr[...] = x
    ds = jnp.zeros((bb * Ho * Wo, Cout), jnp.float32)
    for kw in range(2):
        # every other flat position == column parity kw (W is even)
        cols = y_scr[pl.ds(kw, bb * H * Wo, 2), :]       # (bb*H*Wo, C)
        cols = cols.reshape(bb, Ho, 2, Wo, C)            # row split: leading dims
        for kh in range(2):
            tap = cols[:, :, kh].reshape(bb * Ho * Wo, C)
            ds = ds + jnp.dot(tap.astype(jnp.bfloat16), dsw_ref[2 * kh + kw],
                              preferred_element_type=jnp.float32)
    ds = ds + dsb_ref[...]
    o_ref[...] = ds.reshape(bb, Ho, Wo, Cout).astype(o_ref.dtype)


def _pick_batch_block(batch, hw):
    """Images per grid step for the fused stage kernel.

    Prefer >=2 parallel grid steps (v7x megacore, DMA/compute overlap) as long
    as each step still hands the MXU a reasonable M = bb*H*W; cap rows per
    step so the (rows, F) f32 MLP intermediate stays well inside VMEM (v7x has
    only 64 MiB physical)."""
    divisors = [d for d in range(1, batch + 1) if batch % d == 0]
    fits = [d for d in divisors if d * hw <= 2048] or [1]
    multi = [d for d in fits if batch // d >= 2]
    good = [d for d in multi if d * hw >= 256]
    if good:
        return min(good)
    big = [d for d in fits if d * hw >= 256]
    if big:
        return min(big)
    return max(multi) if multi else max(fits)


def convnext_stage(grid_nhwc, stage_p, kernel_size):
    """One ConvNextDownStage: `depth` fused ConvNextBlocks + 2x2/2 downsample,
    all inside a single pallas_call (activation stays resident in VMEM)."""
    B, H, W, C = grid_nhwc.shape
    assert H % 2 == 0 and W % 2 == 0, "spatial dims must be even to downsample"
    K = kernel_size
    depth = stage_p["conv_w"].shape[0]
    F = stage_p["w1"].shape[-1]
    Cout = stage_p["ds_w"].shape[-1]
    bb = _pick_batch_block(B, H * W)
    Ho, Wo = H // 2, W // 2

    kernel = functools.partial(_stage_kernel, H=H, W=W, K=K, depth=depth,
                               roll_like_jnp=_roll_matches_jnp())

    block = lambda b: (b, 0, 0, 0)
    c3 = lambda b: (0, 0, 0)
    c2 = lambda b: (0, 0)
    return pl.pallas_call(
        kernel,
        out_shape=jax.ShapeDtypeStruct((B, Ho, Wo, Cout), jnp.bfloat16),
        grid=(B // bb,),
        in_specs=[
            pl.BlockSpec((bb, H, W, C), block),
            pl.BlockSpec((depth, K * K, C), c3),   # resident stacked weights
            pl.BlockSpec((depth, 1, C), c3),
            pl.BlockSpec((depth, 1, C), c3),
            pl.BlockSpec((depth, 1, C), c3),
            pl.BlockSpec((depth, C, F), c3),
            pl.BlockSpec((depth, 1, F), c3),
            pl.BlockSpec((depth, F, C), c3),
            pl.BlockSpec((depth, 1, C), c3),
            pl.BlockSpec((4, C, Cout), c3),
            pl.BlockSpec((1, Cout), c2),
        ],
        out_specs=pl.BlockSpec((bb, Ho, Wo, Cout), block),
        scratch_shapes=[pltpu.VMEM((bb * H * W, C), jnp.float32)],
        compiler_params=pltpu.CompilerParams(dimension_semantics=("parallel",)),
    )(grid_nhwc, stage_p["conv_w"], stage_p["conv_b"], stage_p["w_norm"],
      stage_p["b_norm"], stage_p["w1"], stage_p["b1"], stage_p["w2"],
      stage_p["b2"], stage_p["ds_w"], stage_p["ds_b"])


# ----------------------------------------------------------------------------
# Model glue (reshapes / parameter plumbing in plain JAX)
# ----------------------------------------------------------------------------
def convnext_forward(x_nchw, params, *, patch_size, kernel_size):
    B, Cin, H, W = x_nchw.shape
    P = patch_size
    Hs, Ws = H // P, W // P
    d0 = params["stem_b"].shape[-1]

    # stem: Conv2d(Cin, d0, k=P, stride=P) == patch extraction + matmul, with
    # the post-stem LayerNorm fused in as an epilogue.
    patches = (x_nchw.reshape(B, Cin, Hs, P, Ws, P)
               .transpose(0, 2, 4, 1, 3, 5)            # (B, Hs, Ws, Cin, P, P)
               .reshape(B * Hs * Ws, Cin * P * P))
    tok = stem_patchify_ln(patches, params["stem_w"], params["stem_b"],
                           params["norm_g"], params["norm_b"])   # (B*L, d0) bf16

    g = tok.reshape(B, Hs, Ws, d0)                      # contiguous, no data move
    for stage_p in params["stages"]:
        g = convnext_stage(g, stage_p, kernel_size)

    # final tokens_to_grid -> NCHW (matches the PyTorch return convention)
    return g.astype(jnp.float32).transpose(0, 3, 1, 2)


def init_params(key, in_channels, depths, dims, kernel_size, patch_size):
    """Parameters in the original torch layouts."""
    keys = iter(jax.random.split(key, 512))

    def nrm(shape, scale=0.05):
        return scale * jax.random.normal(next(keys), shape, jnp.float32)

    params = {
        "stem_w": nrm((dims[0], in_channels, patch_size, patch_size)),
        "stem_b": nrm((dims[0],)),
        "norm_g": 1.0 + nrm((dims[0],)),
        "norm_b": nrm((dims[0],)),
        "stages": [],
    }
    for i in range(len(depths) - 1):
        dim, out_dim = dims[i], dims[i + 1]
        ff = 4 * dim  # dim_feedforward default
        blocks = []
        for _ in range(depths[i]):
            blocks.append({
                "conv_w": nrm((dim, 1, kernel_size, kernel_size)),  # torch dw-conv
                "conv_b": nrm((dim,)),
                "w_norm": 1.0 + nrm((dim,)),
                "b_norm": nrm((dim,)),
                "w_in": nrm((ff, dim)),     # torch Linear (out, in)
                "b_in": nrm((ff,)),
                "w_out": nrm((dim, ff)),
                "b_out": nrm((dim,)),
            })
        params["stages"].append({
            "blocks": blocks,
            "ds_w": nrm((out_dim, dim, 2, 2)),
            "ds_b": nrm((out_dim,)),
        })
    return params


def prepare_params(raw):
    """One-time conversion to kernel-ready layouts (stacked per-stage weights,
    transposed, bf16 MXU operands)."""
    d0 = raw["stem_b"].shape[0]
    prep = {
        "stem_w": raw["stem_w"].reshape(d0, -1).T.astype(jnp.bfloat16),
        "stem_b": raw["stem_b"].reshape(1, d0),
        "norm_g": raw["norm_g"].reshape(1, d0),
        "norm_b": raw["norm_b"].reshape(1, d0),
        "stages": [],
    }
    for st in raw["stages"]:
        blocks = st["blocks"]
        out_dim = st["ds_b"].shape[0]
        C = blocks[0]["conv_b"].shape[0]
        K = blocks[0]["conv_w"].shape[-1]
        F = blocks[0]["b_in"].shape[0]
        prep["stages"].append({
            "conv_w": jnp.stack([
                jnp.transpose(b["conv_w"][:, 0], (1, 2, 0)).reshape(K * K, C)
                for b in blocks]),                                   # (D,K*K,C) f32
            "conv_b": jnp.stack([b["conv_b"].reshape(1, C) for b in blocks]),
            "w_norm": jnp.stack([b["w_norm"].reshape(1, C) for b in blocks]),
            "b_norm": jnp.stack([b["b_norm"].reshape(1, C) for b in blocks]),
            "w1": jnp.stack([b["w_in"].T for b in blocks]).astype(jnp.bfloat16),
            "b1": jnp.stack([b["b_in"].reshape(1, F) for b in blocks]),
            "w2": jnp.stack([b["w_out"].T for b in blocks]).astype(jnp.bfloat16),
            "b2": jnp.stack([b["b_out"].reshape(1, C) for b in blocks]),
            # 2x2 downsample, pre-split per (kh, kw) tap: (4, C, out)
            "ds_w": jnp.transpose(st["ds_w"], (2, 3, 1, 0))
                      .reshape(4, C, out_dim).astype(jnp.bfloat16),
            "ds_b": st["ds_b"].reshape(1, out_dim),
        })
    return prep


# ----------------------------------------------------------------------------
# Pure-JAX f32 reference of the PyTorch forward (for correctness checking)
# ----------------------------------------------------------------------------
def reference_forward(x_nchw, raw, *, patch_size, kernel_size):
    P = patch_size
    p = kernel_size // 2
    hp = jax.lax.Precision.HIGHEST

    def ln(t, g, b):
        mu = t.mean(-1, keepdims=True)
        var = ((t - mu) ** 2).mean(-1, keepdims=True)
        return (t - mu) * jax.lax.rsqrt(var + EPS) * g + b

    y = jax.lax.conv_general_dilated(
        x_nchw, raw["stem_w"], (P, P), "VALID",
        dimension_numbers=("NCHW", "OIHW", "NCHW"), precision=hp)
    y = y + raw["stem_b"][None, :, None, None]
    g = jnp.transpose(y, (0, 2, 3, 1))
    g = ln(g, raw["norm_g"], raw["norm_b"])

    for st in raw["stages"]:
        dim = st["blocks"][0]["conv_b"].shape[0]
        for blk in st["blocks"]:
            z = jnp.transpose(g, (0, 3, 1, 2))
            z = jax.lax.conv_general_dilated(
                z, blk["conv_w"], (1, 1), [(p, p), (p, p)],
                feature_group_count=dim,
                dimension_numbers=("NCHW", "OIHW", "NCHW"), precision=hp)
            z = z + blk["conv_b"][None, :, None, None]
            z = jnp.transpose(z, (0, 2, 3, 1))
            zn = ln(z, blk["w_norm"], blk["b_norm"])
            h1 = jnp.einsum("bhwc,fc->bhwf", zn, blk["w_in"], precision=hp)
            h1 = jnp.maximum(h1 + blk["b_in"], 0.0) ** 2
            mlp = jnp.einsum("bhwf,cf->bhwc", h1, blk["w_out"],
                             precision=hp) + blk["b_out"]
            g = g + mlp
        z = jnp.transpose(g, (0, 3, 1, 2))
        z = jax.lax.conv_general_dilated(
            z, st["ds_w"], (2, 2), "VALID",
            dimension_numbers=("NCHW", "OIHW", "NCHW"), precision=hp)
        z = z + st["ds_b"][None, :, None, None]
        g = jnp.transpose(z, (0, 2, 3, 1))

    return jnp.transpose(g, (0, 3, 1, 2))


if __name__ == "__main__":
    in_channels = 1
    depths = (2, 2, 2)          # last entry unused, matching the module (len-1 stages)
    dims = (64, 128, 256)
    kernel_size = 7             # module default
    patch_size = 4

    key = jax.random.PRNGKey(0)
    kp, kx = jax.random.split(key)
    raw_params = init_params(kp, in_channels, depths, dims, kernel_size, patch_size)
    params = prepare_params(raw_params)

    _roll_matches_jnp()         # resolve the roll convention before tracing

    x = jax.random.normal(kx, (2, in_channels, 32, 32), jnp.float32)

    fwd = jax.jit(functools.partial(
        convnext_forward, patch_size=patch_size, kernel_size=kernel_size))
    out = jax.block_until_ready(fwd(x, params))

    # 32 -> stem /4 -> 8 -> two stride-2 downsamples -> 2 ; channels = dims[-1]
    expected = (2, dims[len(depths) - 1], 2, 2)
    assert out.shape == expected, f"got {out.shape}, expected {expected}"
    assert bool(jnp.all(jnp.isfinite(out)))

    # numerical check against the pure-JAX f32 reference (bf16 MXU / storage
    # tolerance: relative L2 error well under a few percent, O(1) on a bug)
    ref = reference_forward(x, raw_params, patch_size=patch_size,
                            kernel_size=kernel_size)
    rel = float(jnp.linalg.norm((out - ref).ravel())
                / (jnp.linalg.norm(ref.ravel()) + 1e-6))
    assert rel < 0.05, f"kernel/reference mismatch: relative L2 error {rel:.4f}"
    print("KERNEL_OK")
</pallas_src>

<mosaic_0001>
module attributes {stable_mosaic.version = 11 : i64} {
  func.func @kern(%arg0: memref<8x128xf32, #tpu.memory_space<vmem>>, %arg1: memref<8x128xf32, #tpu.memory_space<vmem>>) attributes {dimension_semantics = [], scalar_prefetch = 0 : i64, scratch_operands = 0 : i64, tpu.core_type = #tpu.core_type<tc>} {
    %c0 = arith.constant 0 : index
    %c0_0 = arith.constant 0 : index
    %0 = vector.load %arg0[%c0, %c0_0] : memref<8x128xf32, #tpu.memory_space<vmem>>, vector<8x128xf32>
    %c1_i32 = arith.constant 1 : i32
    %1 = tpu.dynamic_rotate %0 by %c1_i32 dim 0 : vector<8x128xf32>, i32 -> vector<8x128xf32>
    %c0_1 = arith.constant 0 : index
    %c0_2 = arith.constant 0 : index
    %2 = vector.load %arg1[%c0_1, %c0_2] : memref<8x128xf32, #tpu.memory_space<vmem>>, vector<8x128xf32>
    tpu.vector_store %arg1[%c0_1, %c0_2], %1 {strides = array<i32>} : memref<8x128xf32, #tpu.memory_space<vmem>>, vector<8x128xf32>,
    return
  }
}

</mosaic_0001>

<bundles_post_ra>
// kernel: tpu_custom_call.1
= control target key start
LH: loop header
LB: loop body
LE: loop exit
PB: predicated region body
PF: predicated region fallthrough
CT: control target
= control target key end

     0   :  { %6 = vsyncpa [#allocation3], 0  ;;  %s115_s0 = inlined_call_operand.hbm [shape: f32[8,128], index: 0, kind: input, shape index: {}]   ;;  %s116_s1 = inlined_call_operand.hbm [shape: f32[8,128], index: 1, kind: output, shape index: {}]  }
   0x1   :  { %7 = vsyncpa [#allocation4], 0  ;;  %s13_s8 = sshll.u32 %s115_s0, 4  ;;  %s97_s9 = smov [#allocation2]   ;;  %s14_s8 = int_to_ptr.hbm [resolvable:$true] %s13_s8 }
   0x2   :  { %s15_s10 = sshll.u32 %s97_s9, 4  ;;  %s16_s10 = int_to_ptr.vmem [resolvable:$true] %s15_s10 }
   0x3   :  { %18 = dma.hbm_to_vmem [thread:$0]  %s14_s8, 128, %s16_s10, [#allocation3]  }
   0x4   :  { %93 = dma.done.wait [#allocation3], 128  }
   0x5   :  { %94 = vsyncadd [#allocation3], 4294967168  ;;  %s98_s11 = smov [#allocation5]   ;;  %s33_s15 = sshll.u32 %s116_s1, 4  ;;  %v23_v0 = vld [vmem:[#allocation2] sm:$0xff]  ;;  %s34_s15 = int_to_ptr.hbm [resolvable:$true] %s33_s15 }
   0x6   :  { %s31_s12 = sshll.u32 %s98_s11, 4  ;;  %v24_v1 = vrot.slane %v23_v0, 7  ;;  %s32_s12 = int_to_ptr.vmem [resolvable:$true] %s31_s12 }
   0x8   :  { %25 = vst [vmem:[#allocation5] sm:$0xff] %v24_v1 }
   0x9   :  { %36 = dma.vmem_to_hbm [thread:$0]  %s32_s12, 128, %s34_s15, [#allocation4]  }
   0xa   :  { %95 = dma.done.wait [#allocation4], 128  }
   0xb   :  { %96 = vsyncadd [#allocation4], 4294967168 }
   0xc   :  { %41 = vsyncpa [#allocation3], 1 }
   0xd   :  { %42 = vsyncpa [#allocation4], 1 }

</bundles_post_ra>
